<compile_context>
chip_gen: v7x
topology: tpu7x:2x2x1
jax: 0.10.0
libtpu: 0.0.40
codegen_flags: <defaults>
</compile_context>

<pallas_src>
import jax
import jax.numpy as jnp
from jax.experimental import pallas as pl
from jax.experimental.pallas import tpu as pltpu

_MAX_ROW_TILE = 2048   # 2048 x H f32 tiles are tiny vs. VMEM on v5e/v6e/v7x
_NO_GRID_MAX_ROWS = 512  # at/below this, one un-gridded invocation is cheapest


def _round_up(x, m):
    return (x + m - 1) // m * m


def _choose_row_tile(m):
    # Big tiles amortize per-grid-step overhead; keeping >=4 steps (when M is
    # large enough) lets v7x's two TensorCores each take >=2 blocks via the
    # "parallel" dimension semantics. v5e/v6e (1 TC) are indifferent.
    tile = min(_MAX_ROW_TILE, _round_up(pl.cdiv(m, 4), 8))
    return max(tile, 8)


def _linear_kernel(x_ref, w_ref, b_ref, o_ref):
    # One MXU matmul (f32 accumulation) + broadcast bias add.
    acc = jnp.dot(x_ref[...], w_ref[...], preferred_element_type=jnp.float32)
    o_ref[...] = (acc + b_ref[...]).astype(o_ref.dtype)


def prepare_decoder_params(weight, bias):
    """Hoisted per-parameter prep: PyTorch Linear W [O, H] -> W^T [H, O], b -> [1, O]."""
    return jnp.asarray(weight).T, jnp.asarray(bias)[None, :]


@jax.jit
def node_rnn_decoder_forward(data, w_t, bias2d):
    """NODE_RNN_Decoder.forward: out = data @ W^T + b (Tanh member unused).

    data:   [..., H]   all leading dims (batch and/or timesteps) are flattened
                       into a single matmul so per-call overhead is amortized.
    w_t:    [H, O]     pre-transposed weight (see prepare_decoder_params).
    bias2d: [1, O]
    returns [..., O]
    """
    *lead, H = data.shape
    O = w_t.shape[1]
    M = 1
    for d in lead:
        M *= d

    x = data.reshape(M, H)
    itemsize = jnp.dtype(data.dtype).itemsize
    cost = pl.CostEstimate(
        flops=2 * M * H * O,
        transcendentals=0,
        bytes_accessed=itemsize * (M * H + H * O + O + M * O),
    )

    if M > _NO_GRID_MAX_ROWS:
        # Gridded path: large row tiles, ragged last block handled by Pallas'
        # boundary masking (no explicit x padding, no output slicing).
        tile = _choose_row_tile(M)
        out = pl.pallas_call(
            _linear_kernel,
            out_shape=jax.ShapeDtypeStruct((M, O), data.dtype),
            grid=(pl.cdiv(M, tile),),
            in_specs=[
                pl.BlockSpec((tile, H), lambda i: (i, 0)),
                pl.BlockSpec((H, O), lambda i: (0, 0)),   # weight VMEM-resident
                pl.BlockSpec((1, O), lambda i: (0, 0)),   # bias VMEM-resident
            ],
            out_specs=pl.BlockSpec((tile, O), lambda i: (i, 0)),
            compiler_params=pltpu.CompilerParams(
                dimension_semantics=("parallel",)),
            cost_estimate=cost,
        )(x, w_t, bias2d)
    else:
        # Tiny path: one un-gridded invocation, whole arrays in VMEM, no padding.
        vmem = pl.BlockSpec(memory_space=pltpu.MemorySpace.VMEM)
        out = pl.pallas_call(
            _linear_kernel,
            out_shape=jax.ShapeDtypeStruct((M, O), data.dtype),
            in_specs=[vmem, vmem, vmem],
            out_specs=vmem,
            cost_estimate=cost,
        )(x, w_t, bias2d)

    return out.reshape(*lead, O)


if __name__ == "__main__":
    key = jax.random.PRNGKey(0)
    k_x, k_w, k_b, k_seq = jax.random.split(key, 4)

    hidden_layer_size = 32
    output_size = 16
    batch = 8
    timesteps = 64  # decode a whole RNN/ODE trajectory in one kernel call

    # Deterministic synthetic parameters (PyTorch Linear shapes: W [O, H], b [O]).
    bound = 1.0 / (hidden_layer_size ** 0.5)
    weight = jax.random.uniform(
        k_w, (output_size, hidden_layer_size), jnp.float32, -bound, bound)
    bias = jax.random.uniform(
        k_b, (output_size,), jnp.float32, -bound, bound)

    # Parameter prep hoisted out of the per-call path (done once).
    w_t, bias2d = prepare_decoder_params(weight, bias)

    # (a) single decoder step, data [B, H]  -> tiny no-grid path
    data_step = jax.random.normal(k_x, (batch, hidden_layer_size), jnp.float32)
    out_step = node_rnn_decoder_forward(data_step, w_t, bias2d)

    # (b) decoder batched across a trajectory, data [T, B_big, H] -> gridded path
    big_batch = 32
    data_seq = jax.random.normal(
        k_seq, (timesteps, big_batch, hidden_layer_size), jnp.float32)
    out_seq = node_rnn_decoder_forward(data_seq, w_t, bias2d)

    jax.block_until_ready((out_step, out_seq))

    # Correctness vs plain-JAX reference of the PyTorch forward semantics.
    ref_step = data_step @ weight.T + bias
    ref_seq = data_seq @ weight.T + bias
    assert out_step.shape == (batch, output_size)
    assert out_seq.shape == (timesteps, big_batch, output_size)
    assert jnp.allclose(out_step, ref_step, atol=1e-5, rtol=1e-5)
    assert jnp.allclose(out_seq, ref_seq, atol=1e-5, rtol=1e-5)

    print("KERNEL_OK")
</pallas_src>

<mosaic_0001>
module attributes {stable_mosaic.version = 11 : i64} {
  func.func @_linear_kernel(%arg0: memref<8x32xf32, #tpu.memory_space<vmem>>, %arg1: memref<32x16xf32, #tpu.memory_space<vmem>>, %arg2: memref<1x16xf32, #tpu.memory_space<vmem>>, %arg3: memref<8x16xf32, #tpu.memory_space<vmem>>) attributes {dimension_semantics = [], scalar_prefetch = 0 : i64, scratch_operands = 0 : i64, tpu.core_type = #tpu.core_type<tc>} {
    %c0 = arith.constant 0 : index
    %c0_0 = arith.constant 0 : index
    %0 = vector.load %arg0[%c0, %c0_0] : memref<8x32xf32, #tpu.memory_space<vmem>>, vector<8x32xf32>
    %c0_1 = arith.constant 0 : index
    %c0_2 = arith.constant 0 : index
    %1 = vector.load %arg1[%c0_1, %c0_2] : memref<32x16xf32, #tpu.memory_space<vmem>>, vector<32x16xf32>
    %cst = arith.constant dense<0.000000e+00> : vector<8x16xf32>
    %2 = tpu.matmul %0, %1, %cst {dimension_numbers = #tpu.dot_dimension_numbers<[1], [0], [0], [1], [0, 0, 1, 1], [], []>} : vector<8x32xf32>, vector<32x16xf32>, vector<8x16xf32> -> vector<8x16xf32>
    %c0_3 = arith.constant 0 : index
    %c0_4 = arith.constant 0 : index
    %3 = vector.load %arg2[%c0_3, %c0_4] : memref<1x16xf32, #tpu.memory_space<vmem>>, vector<1x16xf32>
    %4 = vector.broadcast %3 : vector<1x16xf32> to vector<8x16xf32>
    %5 = arith.addf %2, %4 : vector<8x16xf32>
    %c0_5 = arith.constant 0 : index
    %c0_6 = arith.constant 0 : index
    %6 = vector.load %arg3[%c0_5, %c0_6] : memref<8x16xf32, #tpu.memory_space<vmem>>, vector<8x16xf32>
    tpu.vector_store %arg3[%c0_5, %c0_6], %5 {strides = array<i32>} : memref<8x16xf32, #tpu.memory_space<vmem>>, vector<8x16xf32>,
    return
  }
}

</mosaic_0001>

<bundles_post_ra>
// kernel: node_rnn_decoder_forward.1
= control target key start
LH: loop header
LB: loop body
LE: loop exit
PB: predicated region body
PF: predicated region fallthrough
CT: control target
= control target key end

     0   :  { %v169_v3 = vmov 0.0|0.0   ;;  %vm170_vm0 = vmmov 0   ;;  %v171_v6 = vmov 0.0   ;;  %s223_s0 = inlined_call_operand.vmem [shape: f32[8,32], index: 0, kind: input, shape index: {}]   ;;  %s224_s1 = inlined_call_operand.vmem [shape: f32[32,16], index: 1, kind: input, shape index: {}]   ;;  %s225_s2 = inlined_call_operand.vmem [shape: f32[1,16], index: 2, kind: input, shape index: {}]   ;;  %s226_s3 = inlined_call_operand.hbm [shape: f32[8,16], index: 3, kind: output, shape index: {}]  }
   0x1   :  { %v16_v0 = vld [vmem:[%s224_s1] sm:$0xff]  ;;  %v17_v1 = vld [vmem:[%s224_s1 + $0x8] sm:$0xff]  ;;  %v18_v2 = vld [vmem:[%s224_s1 + $0x10] sm:$0xff]  ;;  %135 = vmatprep.subr.bf16.mxu0 %v169_v3  ;;  %132 = vmatprep.mubr.msk.f32.mxu0 %vm170_vm0, %v171_v6 }
   0x2   :  { %v136_v4 = vpack.c.bf16 %v17_v1, %v16_v0  ;;  %v19_v5 = vld [vmem:[%s224_s1 + $0x18] sm:$0xff] }
   0x3   :  { %8 = vsyncpa [#allocation3], 0  ;;  %v139_v7 = vpack.c.bf16 %v19_v5, %v18_v2  ;;  %v15_v8 = vld [vmem:[%s223_s0] sm:$0xff]  ;;  %vm27_vm1 = vcmask 261120   ;;  %s172_s24 = smov [#allocation2]   ;;  %vm101_vm2 = vcmask 130048  }
   0x4   :  { %137 = vmatpush3.bf16.msra.mxu0 %v136_v4  ;;  %v117_v9 = vld [vmem:[%s225_s2] ss:$0 sm:$0xff]  ;;  %s109_s1 = sshll.u32 %s172_s24, 4  ;;  %s110_s1 = int_to_ptr.vmem [resolvable:$true] %s109_s1 }
   0x5   :  { %138 = vmatprep.subr.bf16.mxu0 %v169_v3  ;;  %s145_s25 = scalar_lea.vmem %s110_s1, 128  ;;  %p150_p1 = scmp.lt.s32.totalorder %s110_s1, %s110_s1 }
   0x6   :  { %p146_p0 = scmp.ne.s32.totalorder %s110_s1, %s145_s25  ;;  %p151_p2 = scmp.lt.s32.totalorder %s145_s25, %s145_s25 }
   0x8   :  { %140 = vmatpush3.bf16.msra.mxu0 %v139_v7  ;;  %p152_p3 = por %p151_p2, %p150_p1 }
   0xa   :  { %p153_p4 = pnand %p152_p3, %p146_p0 }
   0xb   :  { %133 = vmatmul.mubr.msk.f32.vlgmr.msra.gmra.mrb[0].mxu0 %vm27_vm1, %v15_v8 }
  0xde   :  { %v97_v10 = vpop.f32.mrb[0].mxu0 }
  0xdf   :  { %v98_v11 = vadd.f32 %v117_v9, %v97_v10  ;;  %v134_v12 = vpop.f32.mrb[1].mxu0 }
  0xe1   :  { %102 = vst.msk [vmem:[#allocation2] sm:$0xff] %vm101_vm2, %v98_v11 }
  0xe2   :  { %156 = shalt.err (!%p153_p4)
}
  0xe3   :  { %s157_s27 = scalar_lea.hbm %s226_s3, 128 }
  0xe4   :  { %p158_p5 = scmp.ne.s32.totalorder %s226_s3, %s157_s27  ;;  %p161_p6 = scmp.lt.u32.totalorder %s157_s27, %s226_s3 }
  0xe6   :  { %p163_p7 = pnand %p161_p6, %p158_p5 }
  0xe8   :  { %166 = shalt.err (!%p163_p7)
}
  0xe9   :  { %112 = dma.vmem_to_hbm [thread:$0]  %s110_s1, 128, %s226_s3, [#allocation3]  }
  0xea   :  { %167 = dma.done.wait [#allocation3], 128  }
  0xeb   :  { %168 = vsyncadd [#allocation3], 4294967168 }
  0xec   :  { %116 = vsyncpa [#allocation3], 1 }

</bundles_post_ra>
